<compile_context>
chip_gen: v6e
topology: v6e:2x2x1
jax: 0.10.0
libtpu: 0.0.40
codegen_flags: <defaults>
</compile_context>

<pallas_src>
import jax
import jax.numpy as jnp
from jax.experimental import pallas as pl
from jax.experimental.pallas import tpu as pltpu

_LANE = 128             # full lane width -> unmasked vst
_MAX_BLOCK_ROWS = 8192  # 8192*128*4B = 4 MiB/tile; in+out double-buffered = 16 MiB
_VMEM_LIMIT = 48 << 20  # raise scoped-VMEM limit (v5e default 16 MiB); < v7x 64 MiB physical


def _linear_kernel(w_ref, b_ref, x_ref, o_ref):
    # w_ref / b_ref are (1,) scalars in SMEM; x_ref / o_ref are (block_rows, 128)
    # VMEM tiles. Pure elementwise multiply-add on the VPU.
    o_ref[...] = x_ref[...] * w_ref[0] + b_ref[0]


@jax.jit
def linear_regression_forward(x, weight, bias):
    """nn.Linear(1, 1) forward: x (N, 1) f32, weight (1, 1), bias (1,) -> (N, 1)."""
    n = x.shape[0]
    flat = x.reshape(-1)            # (N,) since in_features == 1
    total = flat.shape[0]

    # Lane-dense layout: pack into (rows8, 128) with rows8 a multiple of 8
    # (sublane alignment). Pad is static and <= 1023 elements.
    rows = pl.cdiv(total, _LANE)
    rows8 = ((rows + 7) // 8) * 8
    padded_total = rows8 * _LANE
    pad = padded_total - total       # static Python int

    if pad:
        flat = jnp.pad(flat, (0, pad))
    x2d = flat.reshape(rows8, _LANE)

    block_rows = min(_MAX_BLOCK_ROWS, rows8)   # rows8 < max -> still a multiple of 8
    grid = (pl.cdiv(rows8, block_rows),)       # ragged last block handled by Pallas

    out2d = pl.pallas_call(
        _linear_kernel,
        out_shape=jax.ShapeDtypeStruct((rows8, _LANE), x.dtype),
        grid_spec=pl.GridSpec(
            grid=grid,
            in_specs=[
                pl.BlockSpec(memory_space=pltpu.SMEM),                # weight scalar
                pl.BlockSpec(memory_space=pltpu.SMEM),                # bias scalar
                pl.BlockSpec((block_rows, _LANE), lambda i: (i, 0)),  # x tile
            ],
            out_specs=pl.BlockSpec((block_rows, _LANE), lambda i: (i, 0)),
        ),
        compiler_params=pltpu.CompilerParams(
            dimension_semantics=("parallel",),   # independent tiles
            vmem_limit_bytes=_VMEM_LIMIT,
        ),
        cost_estimate=pl.CostEstimate(
            flops=2 * padded_total,
            transcendentals=0,
            bytes_accessed=8 * padded_total,     # read + write f32
        ),
        # In-place over the (fresh) padded buffer only; skip when x2d may alias
        # the caller's (undonated) input, which would force an XLA copy.
        input_output_aliases=({2: 0} if pad else {}),
    )(weight.reshape((1,)), bias.reshape((1,)), x2d)

    if pad:
        return out2d.reshape(-1)[:total].reshape(n, 1)
    return out2d.reshape(n, 1)


if __name__ == "__main__":
    key = jax.random.PRNGKey(0)
    kx, kw, kb, kx2, kx3 = jax.random.split(key, 5)

    # Deterministic params (mimics nn.Linear's uniform(-1, 1) bound for in_features=1).
    weight = jax.random.uniform(kw, (1, 1), minval=-1.0, maxval=1.0, dtype=jnp.float32)
    bias = jax.random.uniform(kb, (1,), minval=-1.0, maxval=1.0, dtype=jnp.float32)

    # Small shape consistent with nn.Linear(1, 1): batch of 8 samples, 1 feature.
    x_small = jax.random.normal(kx, (8, 1), dtype=jnp.float32)
    y_small = linear_regression_forward(x_small, weight, bias)
    jax.block_until_ready(y_small)
    assert jnp.allclose(y_small, x_small @ weight.T + bias, atol=1e-6), "mismatch (small)"

    # Non-(8*128)-aligned batch: exercises the tiny-pad + slice + alias path.
    x_ragged = jax.random.normal(kx2, (3000, 1), dtype=jnp.float32)
    y_ragged = linear_regression_forward(x_ragged, weight, bias)
    jax.block_until_ready(y_ragged)
    assert jnp.allclose(y_ragged, x_ragged @ weight.T + bias, atol=1e-6), "mismatch (ragged)"

    # (8*128)-aligned batch: no pad, no slice, no alias copy.
    x_aligned = jax.random.normal(kx3, (4096, 1), dtype=jnp.float32)
    y_aligned = linear_regression_forward(x_aligned, weight, bias)
    jax.block_until_ready(y_aligned)
    assert jnp.allclose(y_aligned, x_aligned @ weight.T + bias, atol=1e-6), "mismatch (aligned)"

    print("KERNEL_OK")
</pallas_src>

<mosaic_0001>
module attributes {stable_mosaic.version = 11 : i64} {
  func.func @_linear_kernel(%arg0: i32, %arg1: memref<1xf32, #tpu.memory_space<smem>>, %arg2: memref<1xf32, #tpu.memory_space<smem>>, %arg3: memref<8x128xf32, #tpu.memory_space<vmem>>, %arg4: memref<8x128xf32, #tpu.memory_space<vmem>>) attributes {dimension_semantics = [#tpu.dimension_semantics<parallel>], iteration_bounds = array<i64: 1>, scalar_prefetch = 0 : i64, scratch_operands = 0 : i64, tpu.core_type = #tpu.core_type<tc>, window_params = [{transform_indices = @transform_0, window_bounds = array<i64: 1>}, {transform_indices = @transform_1, window_bounds = array<i64: 1>}, {transform_indices = @transform_2, window_bounds = array<i64: 8, 128>}, {transform_indices = @transform_3, window_bounds = array<i64: 8, 128>}]} {
    %c0 = arith.constant 0 : index
    %c0_0 = arith.constant 0 : index
    %0 = vector.load %arg3[%c0, %c0_0] : memref<8x128xf32, #tpu.memory_space<vmem>>, vector<8x128xf32>
    %c0_1 = arith.constant 0 : index
    %1 = memref.load %arg1[%c0_1] : memref<1xf32, #tpu.memory_space<smem>>
    %2 = vector.broadcast %1 : f32 to vector<8x128xf32>
    %3 = arith.mulf %0, %2 : vector<8x128xf32>
    %c0_2 = arith.constant 0 : index
    %4 = memref.load %arg2[%c0_2] : memref<1xf32, #tpu.memory_space<smem>>
    %5 = vector.broadcast %4 : f32 to vector<8x128xf32>
    %6 = arith.addf %3, %5 : vector<8x128xf32>
    %c0_3 = arith.constant 0 : index
    %c0_4 = arith.constant 0 : index
    %7 = vector.load %arg4[%c0_3, %c0_4] : memref<8x128xf32, #tpu.memory_space<vmem>>, vector<8x128xf32>
    tpu.vector_store %arg4[%c0_3, %c0_4], %6 {strides = array<i32>} : memref<8x128xf32, #tpu.memory_space<vmem>>, vector<8x128xf32>,
    return
  }
  func.func @transform_0(%arg0: i32) -> i32 {
    %c0_i32 = arith.constant 0 : i32
    %c0_i32_0 = arith.constant 0 : i32
    return %c0_i32 : i32
  }
  func.func @transform_1(%arg0: i32) -> i32 {
    %c0_i32 = arith.constant 0 : i32
    %c0_i32_0 = arith.constant 0 : i32
    return %c0_i32 : i32
  }
  func.func @transform_2(%arg0: i32) -> (i32, i32) {
    %c0_i32 = arith.constant 0 : i32
    %c0_i32_0 = arith.constant 0 : i32
    return %arg0, %c0_i32 : i32, i32
  }
  func.func @transform_3(%arg0: i32) -> (i32, i32) {
    %c0_i32 = arith.constant 0 : i32
    %c0_i32_0 = arith.constant 0 : i32
    return %arg0, %c0_i32 : i32, i32
  }
}

</mosaic_0001>

<bundles_post_ra>
// kernel: linear_regression_forward.1
= control target key start
LH: loop header
LB: loop body
LE: loop exit
PB: predicated region body
PF: predicated region fallthrough
CT: control target
= control target key end

     0   :  { %s60_s0 = inlined_call_operand.<no memory space> [shape: f32[1], index: 0, kind: input, shape index: {}]   ;;  %s61_s1 = inlined_call_operand.<no memory space> [shape: f32[1], index: 1, kind: input, shape index: {}]   ;;  %s62_s2 = inlined_call_operand.vmem [shape: f32[8,128], index: 2, kind: input, shape index: {}, may-alias: {2,3}]   ;;  %s63_s3 = inlined_call_operand.vmem [shape: f32[8,128], index: 3, kind: output, shape index: {}, may-alias: {2,3}]  }
   0x1   :  { %v16_v0 = vld [vmem:[%s62_s2] sm:$0xff]  ;;  %v18_v1 = vstv %s60_s0  ;;  %v21_v2 = vstv %s61_s1 }
   0x2   :  { %v19_v3 = vmul.f32 %v18_v1, %v16_v0 }
   0x4   :  { %v22_v4 = vadd.f32 %v21_v2, %v19_v3 }
   0x6   :  { %23 = vst [vmem:[%s63_s3] sm:$0xff] %v22_v4 }

</bundles_post_ra>
